<compile_context>
chip_gen: v5e
topology: v5e:2x2
jax: 0.10.0
libtpu: 0.0.40
codegen_flags: <defaults>
</compile_context>

<pallas_src>
import jax
import jax.numpy as jnp
from jax.experimental import pallas as pl
from jax.experimental.pallas import tpu as pltpu


def _nconv_kernel(x_ref, b_ref, o_ref):
    # x_ref: (TM, G*L)   rows = flattened (n, c, w_outer), lanes = (w_inner, l)
    # b_ref: (G*L, G*V)  kron(I_G, A^T), grid-invariant (stays resident in VMEM)
    # o_ref: (TM, G*V)
    o_ref[...] = jax.lax.dot_general(
        x_ref[...],
        b_ref[...],
        dimension_numbers=(((1,), (0,)), ((), ())),
        precision=jax.lax.Precision.HIGHEST,
        preferred_element_type=jnp.float32,
    ).astype(o_ref.dtype)


def _pick_group(W, L, V, max_lane=128):
    """Largest G dividing W with G*L <= 128 and G*V <= 128 (lane-dense blocks)."""
    if L >= max_lane or V >= max_lane:
        return 1
    g_best = 1
    for g in range(1, W + 1):
        if W % g == 0 and g * L <= max_lane and g * V <= max_lane:
            g_best = g
    return g_best


def _pick_row_tile(M):
    """Largest row tile (multiple of 8, <= 1024) giving >= 2 grid steps if possible."""
    for tm in (1024, 512, 256, 128, 64, 32, 16, 8):
        if M >= 2 * tm:
            return tm
    return 8


def temporal_nconv(x, adj):
    """Pallas TPU implementation of temporalnconv.forward.

    x:   (N, C, W, L) float32
    adj: (V, L) float32
    returns y = einsum('ncwl,vl->ncwv', x, adj), shape (N, C, W, V), contiguous.
    """
    N, C, W, L = x.shape
    V = adj.shape[0]

    # Group G consecutive W positions so loads / matmul / stores are lane-dense.
    G = _pick_group(W, L, V)

    # Free contiguous reshape (no HBM transpose): rows = (n, c, w_outer),
    # lanes = (w_inner, l).
    x2 = x.reshape(N * C * (W // G), G * L)
    M = x2.shape[0]

    # Grid-invariant weight prep, hoisted out of the kernel:
    # B = kron(I_G, A^T);  B[(g,l), (h,v)] = delta(g,h) * A[v,l].
    b = jnp.kron(jnp.eye(G, dtype=adj.dtype), jnp.swapaxes(adj, 0, 1))

    tm = _pick_row_tile(M)
    m_pad = pl.cdiv(M, tm) * tm
    if m_pad != M:
        x2 = jnp.pad(x2, ((0, m_pad - M), (0, 0)))
    grid = (m_pad // tm,)

    out = pl.pallas_call(
        _nconv_kernel,
        out_shape=jax.ShapeDtypeStruct((m_pad, G * V), x.dtype),
        grid_spec=pltpu.PrefetchScalarGridSpec(
            num_scalar_prefetch=0,
            grid=grid,
            in_specs=[
                pl.BlockSpec((tm, G * L), lambda i: (i, 0)),
                pl.BlockSpec((G * L, G * V), lambda i: (0, 0)),
            ],
            out_specs=pl.BlockSpec((tm, G * V), lambda i: (i, 0)),
        ),
        compiler_params=pltpu.CompilerParams(
            dimension_semantics=("parallel",)),
    )(x2, b)

    if m_pad != M:
        out = out[:M]
    # Free contiguous reshape back to (N, C, W, V) -- already the NCWV layout.
    return out.reshape(N, C, W // G, G, V).reshape(N, C, W, V)


if __name__ == "__main__":
    # Small deterministic shapes consistent with the module:
    # x: (N, C, W, L) = (2, 4, 16, 16), adjacency A: (V, L) = (16, 16).
    N, C, W, L = 2, 4, 16, 16

    key = jax.random.PRNGKey(0)
    kx, kadj = jax.random.split(key, 2)
    x = jax.random.normal(kx, (N, C, W, L), dtype=jnp.float32)
    adj = jax.random.normal(kadj, (L, L), dtype=jnp.float32)

    out = temporal_nconv(x, adj)
    out = jax.block_until_ready(out)

    ref = jnp.einsum('ncwl,vl->ncwv', x, adj,
                     precision=jax.lax.Precision.HIGHEST)
    assert out.shape == (N, C, W, L), out.shape
    assert jnp.allclose(out, ref, rtol=1e-4, atol=1e-4), "mismatch vs reference"

    print("KERNEL_OK")
</pallas_src>

<mosaic_0001>
module attributes {stable_mosaic.version = 11 : i64} {
  func.func @_nconv_kernel(%arg0: i32, %arg1: memref<8x128xf32, #tpu.memory_space<vmem>>, %arg2: memref<128x128xf32, #tpu.memory_space<vmem>>, %arg3: memref<8x128xf32, #tpu.memory_space<vmem>>) attributes {dimension_semantics = [#tpu.dimension_semantics<parallel>], iteration_bounds = array<i64: 2>, scalar_prefetch = 0 : i64, scratch_operands = 0 : i64, tpu.core_type = #tpu.core_type<tc>, window_params = [{transform_indices = @transform_0, window_bounds = array<i64: 8, 128>}, {pipeline_mode = #tpu.pipeline_mode<synchronous>, transform_indices = @transform_1, window_bounds = array<i64: 128, 128>}, {transform_indices = @transform_2, window_bounds = array<i64: 8, 128>}]} {
    %c0 = arith.constant 0 : index
    %c0_0 = arith.constant 0 : index
    %0 = vector.load %arg1[%c0, %c0_0] : memref<8x128xf32, #tpu.memory_space<vmem>>, vector<8x128xf32>
    %c0_1 = arith.constant 0 : index
    %c0_2 = arith.constant 0 : index
    %1 = vector.load %arg2[%c0_1, %c0_2] : memref<128x128xf32, #tpu.memory_space<vmem>>, vector<128x128xf32>
    %cst = arith.constant dense<0.000000e+00> : vector<8x128xf32>
    %2 = tpu.matmul %0, %1, %cst {dimension_numbers = #tpu.dot_dimension_numbers<[1], [0], [0], [1], [0, 0, 1, 1], [], []>, precision = #tpu.contract_precision<fp32>} : vector<8x128xf32>, vector<128x128xf32>, vector<8x128xf32> -> vector<8x128xf32>
    %c0_3 = arith.constant 0 : index
    %c0_4 = arith.constant 0 : index
    %3 = vector.load %arg3[%c0_3, %c0_4] : memref<8x128xf32, #tpu.memory_space<vmem>>, vector<8x128xf32>
    tpu.vector_store %arg3[%c0_3, %c0_4], %2 {strides = array<i32>} : memref<8x128xf32, #tpu.memory_space<vmem>>, vector<8x128xf32>,
    return
  }
  func.func @transform_0(%arg0: i32) -> (i32, i32) {
    %c0_i32 = arith.constant 0 : i32
    %c0_i32_0 = arith.constant 0 : i32
    return %arg0, %c0_i32 : i32, i32
  }
  func.func @transform_1(%arg0: i32) -> (i32, i32) {
    %c0_i32 = arith.constant 0 : i32
    %c0_i32_0 = arith.constant 0 : i32
    %c0_i32_1 = arith.constant 0 : i32
    return %c0_i32, %c0_i32_0 : i32, i32
  }
  func.func @transform_2(%arg0: i32) -> (i32, i32) {
    %c0_i32 = arith.constant 0 : i32
    %c0_i32_0 = arith.constant 0 : i32
    return %arg0, %c0_i32 : i32, i32
  }
}

</mosaic_0001>

<bundles_post_ra>
// kernel: tpu_custom_call.1
= control target key start
LH: loop header
LB: loop body
LE: loop exit
PB: predicated region body
PF: predicated region fallthrough
CT: control target
= control target key end

     0   :  { %7 = vsyncpa [#allocation3], 0  ;;  %s1237_s0 = inlined_call_operand.hbm [shape: f32[16,128], index: 0, kind: input, shape index: {}]   ;;  %s1238_s1 = inlined_call_operand.hbm [shape: f32[128,128], index: 1, kind: input, shape index: {}]   ;;  %s1239_s2 = inlined_call_operand.hbm [shape: f32[16,128], index: 2, kind: output, shape index: {}]  }
   0x1   :  { %9 = vsyncpa [#allocation3 + $0x1], 0 }
   0x2   :  { %10 = vsyncpa [#allocation6], 0 }
   0x3   :  { %11 = vsyncpa [#allocation4], 0 }
   0x4   :  { %13 = vsyncpa [#allocation4 + $0x1], 0  ;;  %s856_s9 = smov 0   ;;  %s858_s10 = smov 0  }
   0x5   :  { %s860_s11 = smov 0   ;;  %s862_s12 = smov 0  }
   0x6 LB: > { %s108_s15 = sshll.u32 %s1238_s1, 4  ;;  %s880_s16 = sadd.s32 4294967295, %s836_s12   ;;  %s836_s12 = sphi %s862_s12, %s1249_s12   ;;  %s832_s11 = sphi %s860_s11, %s1248_s11   ;;  %s828_s10 = sphi %s858_s10, %s1247_s10   ;;  %s824_s9 = sphi %s856_s9, %s1246_s9   ;;  %s109_s15 = int_to_ptr.hbm [resolvable:$true] %s108_s15 }
   0x7   : > { %p634_p0 = scmp.ge.s32.totalorder %s836_s12, 1  ;;  %p40_p1 = scmp.eq.s32.totalorder %s880_s16, 0 }
   0x8   : > { %p97_p2 = scmp.lt.s32.totalorder %s836_s12, 3  ;;  %s838_s18 = smov [#allocation5]  }
   0x9   : > { %s110_s19 = sshll.u32 %s838_s18, 4  ;;  %s839_s20 = smov 128   ;;  %s111_s19 = int_to_ptr.vmem [resolvable:$true] %s110_s19 }
   0xa   : > { %p885_p3 = pnand %p634_p0, %p97_p2  ;;  %s840_s21 = smov 8  }
   0xb   : > { %s633_s22 = sadd.s32 4294967294, %s836_s12   ;;  %s896_s23 = sadd.s32 1, %s836_s12  }
   0xc   : > { %p655_p4 = pneg %p885_p3  ;;  %s26_s24 = sadd.s32 1, %s832_s11 }
   0xd   : > { %s23_s25 = ssub.s32 %s836_s12, %s896_s23  ;;  %p33_p7 = scmp.ne.s32.totalorder %s832_s11, %s828_s10 }
   0xe   : > { %p656_p6 = pnand %p655_p4, %p40_p1  ;;  %p24_p8 = scmp.eq.s32.totalorder %s23_s25, 0 }
   0xf   : > { %p34_p9 = scmp.eq.s32.totalorder %s836_s12, 0  ;;  %p39_p10 = scmp.ne.s32.totalorder %s828_s10, %s824_s9 }
  0x10   : > { %658 = dma.hbm_to_vmem [thread:$0]  (!%p656_p6), %s109_s15, 2048, %s111_s19, [#allocation6], %s839_s20, %s839_s20, %s840_s21  }
  0x11   : > { %p84_p11 = scmp.eq.s32.totalorder %s880_s16, 1  ;;  %p912_p12 = por %p40_p1, %p39_p10 }
  0x12   : > { %s908_s26 = scalar_select %p24_p8, %s832_s11, %s26_s24  }
  0x13   : > { %p916_p13 = por %p84_p11, %p33_p7  ;;  %p90_p0 = scmp.eq.s32.totalorder %s633_s22, 1 }
  0x14   : > { %p35_p2 = por %p34_p9, %p33_p7  ;;  %s124_s29 = sand.u32 1, %s832_s11  }
  0x15   : > { %p921_p4 = por %p90_p0, %p39_p10  ;;  %p668_p6 = scmp.lt.s32.totalorder %s836_s12, 2 }
  0x16   : > { %s637_s3 = sshll.u32 %s124_s29, 3  ;;  %s638_s4 = sshll.u32 %s836_s12, 3 }
  0x17   : > { %s132_s7 = scalar_lea.hbm %s1237_s0, %s638_s4  ;;  %s128_s13 = scalar_lea.vmem [#allocation2], %s637_s3 }
  0x18   : > { %s134_s8 = sshll.u32 %s132_s7, 4  ;;  %s136_s14 = sshll.u32 %s128_s13, 4  ;;  %s135_s8 = int_to_ptr.hbm [resolvable:$true] %s134_s8  ;;  %s137_s14 = int_to_ptr.vmem [resolvable:$true] %s136_s14 }
  0x19   : > { %p930_p8 = pnand %p668_p6, %p35_p2  ;;  %s125_s18 = scalar_lea.sflag [#allocation3], %s124_s29 }
  0x1a   : > { %s736_s19 = sshra.s32 %s135_s8, 4  ;;  %s743_s24 = scalar_lea.hbm %s1237_s0, 16  ;;  %s737_s19 = int_to_ptr.hbm [resolvable:$true] %s736_s19 }
  0x1b   : > { %s738_s20 = scalar_lea.hbm %s737_s19, 8  ;;  %p740_p9 = pneg %p930_p8 }
  0x1c   : > { %p739_p7 = scmp.ne.s32.totalorder %s737_s19, %s738_s20  ;;  %p744_p0 = scmp.lt.s32.totalorder %s737_s19, %s1237_s0 }
  0x1d   : > { %p745_p2 = scmp.lt.s32.totalorder %s743_s24, %s738_s20 }
  0x1e   : > { %p741_p10 = pnand %p740_p9, %p739_p7 }
  0x1f   : > { %p746_p6 = por %p745_p2, %p744_p0 }
  0x20   : > { %p742_p11 = pneg %p741_p10 }
  0x22   : > { %p747_p5 = pnand %p746_p6, %p742_p11 }
  0x24   : > { %750 = shalt.err (!%p747_p5)
}
  0x25   : > { %662 = dma.hbm_to_vmem [thread:$0]  (!%p930_p8), %s135_s8, 128, %s137_s14, %s125_s18  }
  0x26   : > { %145 = sbr.rel (%p885_p3) target bundleno = 251 (0xfb), region = 28  ;;  %s947_s29 = sand.u32 (!%p885_p3), 1, %s828_s10  }
  0x27   : > { %s640_s4 = sshll.u32 (!%p885_p3), %s947_s29, 3  ;;  %s148_s5 = scalar_lea.sflag (!%p885_p3), [#allocation3], %s947_s29 }
  0x28   : > { %s953_s6 = scalar_lea.vmem (!%p885_p3), [#allocation2], %s640_s4 }
  0x2b   : > { %811 = dma.done.wait (%p912_p12), %s148_s5, 128  }
  0x2c   : > { %813 = vsyncadd (%p912_p12), %s148_s5, 4294967168 }
  0x2d   : > { %815 = dma.done.wait (%p40_p1), [#allocation6], 2048  }
  0x2e   : > { %817 = vsyncadd (%p40_p1), [#allocation6], 4294965248  ;;  %v194_v0 = vld [vmem:[#allocation5 + $0x78] sm:$0xff]  ;;  %v193_v1 = vld [vmem:[#allocation5 + $0x70] sm:$0xff]  ;;  %s644_s17 = sshll.u32 %s880_s16, 3  ;;  %s177_s13 = scalar_lea.vmem [#allocation7], %s640_s4 }
  0x2f   : > { %v192_v2 = vld [vmem:[#allocation5 + $0x68] sm:$0xff]  ;;  %v963_v3 = vand.u32 4294901760, %v194_v0  ;;  %v965_v4 = vand.u32 4294901760, %v193_v1  ;;  %v191_v6 = vld [vmem:[#allocation5 + $0x60] sm:$0xff]  ;;  %v190_v7 = vld [vmem:[#allocation5 + $0x58] sm:$0xff]  ;;  %s548_s8 = scalar_lea.hbm %s1239_s2, %s644_s17  ;;  %s550_s14 = sshll.u32 %s177_s13, 4  ;;  %s551_s14 = int_to_ptr.vmem [resolvable:$true] %s550_s14 }
  0x30   : > { %v967_v5 = vand.u32 4294901760, %v192_v2  ;;  %v189_v8 = vld [vmem:[#allocation5 + $0x50] sm:$0xff]  ;;  %v969_v9 = vand.u32 4294901760, %v191_v6  ;;  %v971_v10 = vand.u32 4294901760, %v190_v7  ;;  %v188_v12 = vld [vmem:[#allocation5 + $0x48] sm:$0xff]  ;;  %v187_v13 = vld [vmem:[#allocation5 + $0x40] sm:$0xff] }
  0x31   : > { %v973_v11 = vand.u32 4294901760, %v189_v8  ;;  %196 = vmatpush.msra.mxu0 %v963_v3  ;;  %v977_v14 = vsub.f32 %v194_v0, %v963_v3  ;;  %v980_v15 = vsub.f32 %v193_v1, %v965_v4  ;;  %v985_v17 = vand.u32 4294901760, %v188_v12  ;;  %v186_v18 = vld [vmem:[#allocation5 + $0x38] sm:$0xff]  ;;  %392 = vmatpush.msra.mxu3 %v963_v3  ;;  %v185_v26 = vld [vmem:[#allocation5 + $0x30] sm:$0xff]  ;;  %v184_v36 = vld [vmem:[#allocation5 + $0x28] sm:$0xff]  ;;  %s552_s15 = sshll.u32 %s548_s8, 4  ;;  %s553_s15 = int_to_ptr.hbm [resolvable:$true] %s552_s15 }
  0x32   : > { %v983_v16 = vsub.f32 %v192_v2, %v967_v5  ;;  %v989_v19 = vsub.f32 %v191_v6, %v969_v9  ;;  %v992_v20 = vsub.f32 %v190_v7, %v971_v10  ;;  %v1001_v25 = vand.u32 4294901760, %v187_v13  ;;  %v183_v42 = vld [vmem:[#allocation5 + $0x20] sm:$0xff]  ;;  %v182_v47 = vld [vmem:[#allocation5 + $0x18] sm:$0xff]  ;;  %v181_v55 = vld [vmem:[#allocation5 + $0x10] sm:$0xff]  ;;  %s538_s18 = scalar_lea.sflag [#allocation4], %s947_s29  ;;  %s780_s19 = sshra.s32 %s553_s15, 4  ;;  %s781_s19 = int_to_ptr.hbm [resolvable:$true] %s780_s19 }
  0x33   : > { %v995_v21 = vsub.f32 %v189_v8, %v973_v11  ;;  %198 = vmatpush.msra.mxu0 %v965_v4  ;;  %v238_v22 = vand.u32 4294901760, %v977_v14  ;;  %v244_v23 = vand.u32 4294901760, %v980_v15  ;;  %339 = vmatpush.msra.mxu2 %v977_v14  ;;  %v1005_v28 = vand.u32 4294901760, %v186_v18  ;;  %v180_v60 = vld [vmem:[#allocation5 + $0x8] sm:$0xff]  ;;  %v179_v1 = vld [vmem:[#allocation5] sm:$0xff]  ;;  %v178_v7 = vld [vmem:[%s953_s6] sm:$0xff]  ;;  %p787_p12 = scmp.lt.s32.totalorder %s781_s19, %s1239_s2 }
  0x34   : > { %v250_v24 = vand.u32 4294901760, %v983_v16  ;;  %v256_v27 = vand.u32 4294901760, %v989_v19  ;;  %v1008_v29 = vsub.f32 %v188_v12, %v985_v17  ;;  %394 = vmatpush.msra.mxu3 %v965_v4  ;;  %v262_v33 = vand.u32 4294901760, %v992_v20  ;;  %s782_s16 = scalar_lea.hbm %s781_s19, 8  ;;  %s786_s22 = scalar_lea.hbm %s1239_s2, 16 }
  0x35   : > { %200 = vmatpush.msra.mxu0 %v967_v5  ;;  %v239_v30 = vsub.f32 %v977_v14, %v238_v22  ;;  %v245_v31 = vsub.f32 %v980_v15, %v244_v23  ;;  %342 = vmatpush.msra.mxu2 %v980_v15  ;;  %v268_v34 = vand.u32 4294901760, %v995_v21  ;;  %v1024_v35 = vand.u32 4294901760, %v185_v26  ;;  %p783_p1 = scmp.ne.s32.totalorder %s781_s19, %s782_s16  ;;  %p788_p8 = scmp.lt.s32.totalorder %s786_s22, %s782_s16 }
  0x36   : > { %v251_v32 = vsub.f32 %v983_v16, %v250_v24  ;;  %396 = vmatpush.msra.mxu3 %v967_v5  ;;  %v257_v39 = vsub.f32 %v989_v19, %v256_v27  ;;  %v1032_v40 = vsub.f32 %v187_v13, %v1001_v25  ;;  %v274_v41 = vand.u32 4294901760, %v1008_v29 }
  0x37   : > { %v240_v37 = vand.u32 4294901760, %v239_v30  ;;  %202 = vmatpush.msra.mxu0 %v969_v9  ;;  %v246_v38 = vand.u32 4294901760, %v245_v31  ;;  %345 = vmatpush.msra.mxu2 %v983_v16  ;;  %v263_v44 = vsub.f32 %v992_v20, %v262_v33  ;;  %v1041_v45 = vand.u32 4294901760, %v184_v36  ;;  %p784_p3 = pnand %p783_p1, %p916_p13  ;;  %p789_p7 = por %p788_p8, %p787_p12 }
  0x38   : > { %398 = vmatpush.msra.mxu3 %v969_v9  ;;  %v252_v43 = vand.u32 4294901760, %v251_v32  ;;  %v1044_v46 = vsub.f32 %v186_v18, %v1005_v28  ;;  %v269_v48 = vsub.f32 %v995_v21, %v268_v34  ;;  %v258_v49 = vand.u32 4294901760, %v257_v39 }
  0x39   : > { %241 = vmatpush.msra.mxu1 %v240_v37  ;;  %204 = vmatpush.msra.mxu0 %v971_v10  ;;  %v280_v50 = vand.u32 4294901760, %v1032_v40  ;;  %v1053_v51 = vand.u32 4294901760, %v183_v42  ;;  %v1056_v52 = vsub.f32 %v185_v26, %v1024_v35  ;;  %v275_v53 = vsub.f32 %v1008_v29, %v274_v41  ;;  %p785_p5 = pneg %p784_p3 }
  0x3a   : > { %348 = vmatpush.msra.mxu2 %v989_v19  ;;  %400 = vmatpush.msra.mxu3 %v971_v10  ;;  %v1061_v54 = vand.u32 4294901760, %v182_v47  ;;  %v264_v56 = vand.u32 4294901760, %v263_v44  ;;  %v286_v57 = vand.u32 4294901760, %v1044_v46  ;;  %v1068_v58 = vsub.f32 %v184_v36, %v1041_v45 }
  0x3b   : > { %247 = vmatpush.msra.mxu1 %v246_v38  ;;  %206 = vmatpush.msra.mxu0 %v973_v11  ;;  %v270_v59 = vand.u32 4294901760, %v269_v48  ;;  %v281_v61 = vsub.f32 %v1032_v40, %v280_v50  ;;  %v292_v62 = vand.u32 4294901760, %v1056_v52  ;;  %v1077_v63 = vand.u32 4294901760, %v181_v55  ;;  %p790_p9 = pnand %p789_p7, %p785_p5 }
  0x3c   : > { %351 = vmatpush.msra.mxu2 %v992_v20  ;;  %402 = vmatpush.msra.mxu3 %v973_v11  ;;  %v1080_v0 = vsub.f32 %v183_v42, %v1053_v51  ;;  %v276_v2 = vand.u32 4294901760, %v275_v53  ;;  %v1083_v6 = vsub.f32 %v182_v47, %v1061_v54  ;;  %v287_v8 = vsub.f32 %v1044_v46, %v286_v57 }
  0x3d   : > { %253 = vmatpush.msra.mxu1 %v252_v43  ;;  %208 = vmatpush.msra.mxu0 %v985_v17  ;;  %v298_v12 = vand.u32 4294901760, %v1068_v58  ;;  %v1093_v13 = vand.u32 4294901760, %v180_v60  ;;  %v1095_v18 = vand.u32 4294901760, %v178_v7  ;;  %v1097_v26 = vand.u32 4294901760, %v179_v1 }
  0x3e   : > { %354 = vmatpush.msra.mxu2 %v995_v21  ;;  %404 = vmatpush.msra.mxu3 %v985_v17  ;;  %v282_v30 = vand.u32 4294901760, %v281_v61  ;;  %v293_v31 = vsub.f32 %v1056_v52, %v292_v62  ;;  %v304_v32 = vand.u32 4294901760, %v1080_v0  ;;  %v1107_v36 = vsub.f32 %v181_v55, %v1077_v63 }
  0x3f   : > { %259 = vmatpush.msra.mxu1 %v258_v49  ;;  %210 = vmatpush.msra.mxu0 %v1001_v25  ;;  %v310_v37 = vand.u32 4294901760, %v1083_v6  ;;  %v288_v38 = vand.u32 4294901760, %v287_v8  ;;  %v299_v39 = vsub.f32 %v1068_v58, %v298_v12  ;;  %v1117_v42 = vsub.f32 %v180_v60, %v1093_v13 }
  0x40   : > { %357 = vmatpush.msra.mxu2 %v1008_v29  ;;  %406 = vmatpush.msra.mxu3 %v1001_v25  ;;  %v228_v43 = vsub.f32 %v178_v7, %v1095_v18  ;;  %v294_v44 = vand.u32 4294901760, %v293_v31  ;;  %v305_v47 = vsub.f32 %v1080_v0, %v304_v32  ;;  %v316_v48 = vand.u32 4294901760, %v1107_v36 }
  0x41   : > { %265 = vmatpush.msra.mxu1 %v264_v56  ;;  %212 = vmatpush.msra.mxu0 %v1005_v28  ;;  %v1128_v49 = vsub.f32 %v179_v1, %v1097_v26  ;;  %v300_v53 = vand.u32 4294901760, %v299_v39  ;;  %v311_v55 = vsub.f32 %v1083_v6, %v310_v37  ;;  %v322_v56 = vand.u32 4294901760, %v1117_v42 }
  0x42   : > { %360 = vmatpush.msra.mxu2 %v1032_v40  ;;  %408 = vmatpush.msra.mxu3 %v1005_v28  ;;  %v306_v60 = vand.u32 4294901760, %v305_v47  ;;  %v317_v61 = vsub.f32 %v1107_v36, %v316_v48 }
  0x43   : > { %271 = vmatpush.msra.mxu1 %v270_v59  ;;  %214 = vmatpush.msra.mxu0 %v1024_v35  ;;  %v229_v59 = vand.u32 4294901760, %v228_v43  ;;  %v328_v1 = vand.u32 4294901760, %v1128_v49  ;;  %v323_v7 = vsub.f32 %v1117_v42, %v322_v56 }
  0x44   : > { %363 = vmatpush.msra.mxu2 %v1044_v46  ;;  %410 = vmatpush.msra.mxu3 %v1024_v35 }
  0x45   : > { %277 = vmatpush.msra.mxu1 %v276_v2  ;;  %216 = vmatpush.msra.mxu0 %v1041_v45  ;;  %v312_v2 = vand.u32 4294901760, %v311_v55  ;;  %v230_v8 = vsub.f32 %v228_v43, %v229_v59  ;;  %v329_v31 = vsub.f32 %v1128_v49, %v328_v1 }
  0x46   : > { %366 = vmatpush.msra.mxu2 %v1056_v52  ;;  %412 = vmatpush.msra.mxu3 %v1041_v45 }
  0x47   : > { %283 = vmatpush.msra.mxu1 %v282_v30  ;;  %218 = vmatpush.msra.mxu0 %v1053_v51  ;;  %v318_v30 = vand.u32 4294901760, %v317_v61  ;;  %v231_v39 = vand.u32 4294901760, %v230_v8 }
  0x48   : > { %369 = vmatpush.msra.mxu2 %v1068_v58  ;;  %414 = vmatpush.msra.mxu3 %v1053_v51 }
  0x49   : > { %289 = vmatpush.msra.mxu1 %v288_v38  ;;  %220 = vmatpush.msra.mxu0 %v1061_v54  ;;  %v324_v38 = vand.u32 4294901760, %v323_v7 }
  0x4a   : > { %372 = vmatpush.msra.mxu2 %v1080_v0  ;;  %416 = vmatpush.msra.mxu3 %v1061_v54 }
  0x4b   : > { %295 = vmatpush.msra.mxu1 %v294_v44  ;;  %222 = vmatpush.msra.mxu0 %v1077_v63  ;;  %v330_v44 = vand.u32 4294901760, %v329_v31 }
  0x4c   : > { %375 = vmatpush.msra.mxu2 %v1083_v6  ;;  %418 = vmatpush.msra.mxu3 %v1077_v63 }
  0x4d   : > { %301 = vmatpush.msra.mxu1 %v300_v53  ;;  %224 = vmatpush.msra.mxu0 %v1093_v13 }
  0x4e   : > { %378 = vmatpush.msra.mxu2 %v1107_v36  ;;  %420 = vmatpush.msra.mxu3 %v1093_v13 }
  0x4f   : > { %307 = vmatpush.msra.mxu1 %v306_v60  ;;  %226 = vmatpush.msra.mxu0 %v1097_v26 }
  0x50   : > { %381 = vmatpush.msra.mxu2 %v1117_v42  ;;  %422 = vmatpush.msra.mxu3 %v1097_v26 }
  0x51   : > { %433 = vmatpush.msrb.mxu0 %v238_v22  ;;  %313 = vmatpush.msra.mxu1 %v312_v2 }
  0x52   : > { %384 = vmatpush.msra.mxu2 %v1128_v49  ;;  %426 = vmatmul.f32.vlgmr.msra.gmra.mxu3 %v229_v59 }
  0x53   : > { %437 = vmatpush.msrb.mxu0 %v244_v23  ;;  %319 = vmatpush.msra.mxu1 %v318_v30 }
  0x54   : > { %387 = vmatmul.f32.vlgmr.msra.gmra.mxu2 %v228_v43  ;;  %232 = vmatmul.f32.vlgmr.msra.gmra.mxu0 %v231_v39 }
  0x55   : > { %441 = vmatpush.msrb.mxu0 %v250_v24  ;;  %325 = vmatpush.msra.mxu1 %v324_v38 }
  0x57   : > { %445 = vmatpush.msrb.mxu0 %v256_v27  ;;  %331 = vmatpush.msra.mxu1 %v330_v44 }
  0x58   : > { %333 = vmatmul.f32.vlgmr.msra.gmra.mxu1 %v1095_v18 }
  0x59   : > { %500 = vmatpush.msrb.mxu1 %v963_v3  ;;  %449 = vmatpush.msrb.mxu0 %v262_v33 }
  0x5b   : > { %502 = vmatpush.msrb.mxu1 %v965_v4  ;;  %453 = vmatpush.msrb.mxu0 %v268_v34 }
  0x5d   : > { %504 = vmatpush.msrb.mxu1 %v967_v5  ;;  %457 = vmatpush.msrb.mxu0 %v274_v41 }
  0x5f   : > { %506 = vmatpush.msrb.mxu1 %v969_v9  ;;  %461 = vmatpush.msrb.mxu0 %v280_v50 }
  0x61   : > { %508 = vmatpush.msrb.mxu1 %v971_v10  ;;  %465 = vmatpush.msrb.mxu0 %v286_v57 }
  0x63   : > { %510 = vmatpush.msrb.mxu1 %v973_v11  ;;  %469 = vmatpush.msrb.mxu0 %v292_v62 }
  0x65   : > { %512 = vmatpush.msrb.mxu1 %v985_v17  ;;  %473 = vmatpush.msrb.mxu0 %v298_v12 }
  0x67   : > { %514 = vmatpush.msrb.mxu1 %v1001_v25  ;;  %477 = vmatpush.msrb.mxu0 %v304_v32 }
  0x69   : > { %516 = vmatpush.msrb.mxu1 %v1005_v28  ;;  %481 = vmatpush.msrb.mxu0 %v310_v37 }
  0x6b   : > { %518 = vmatpush.msrb.mxu1 %v1024_v35  ;;  %485 = vmatpush.msrb.mxu0 %v316_v48 }
  0x6d   : > { %520 = vmatpush.msrb.mxu1 %v1041_v45  ;;  %489 = vmatpush.msrb.mxu0 %v322_v56 }
  0x6f   : > { %522 = vmatpush.msrb.mxu1 %v1053_v51  ;;  %493 = vmatpush.msrb.mxu0 %v328_v1 }
  0x70   : > { %495 = vmatmul.f32.vlgmr.msrb.gmra.mxu0 %v1095_v18 }
  0x71   : > { %524 = vmatpush.msrb.mxu1 %v1061_v54 }
  0x73   : > { %526 = vmatpush.msrb.mxu1 %v1077_v63 }
  0x75   : > { %528 = vmatpush.msrb.mxu1 %v1093_v13 }
  0x77   : > { %530 = vmatpush.msrb.mxu1 %v1097_v26 }
  0x78   : > { %532 = vmatmul.f32.vlgmr.msrb.gmra.mxu1 %v1095_v18 }
  0xd1   : > { %v233_v4 = vpop.f32.mrf.mxu0 }
  0xd5   : > { %v334_v3 = vpop.f32.mrf.mxu1  ;;  %v427_v11 = vpop.f32.mrf.mxu3 }
  0xd6   : > { %v335_v5 = vadd.f32 %v334_v3, %v233_v4 }
  0xd7   : > { %v388_v9 = vpop.f32.mrf.mxu2 }
  0xd8   : > { %v389_v10 = vadd.f32 %v388_v9, %v335_v5 }
  0xda   : > { %v428_v14 = vadd.f32 %v427_v11, %v389_v10 }
  0xed   : > { %v496_v15 = vpop.f32.mrf.mxu0 }
  0xee   : > { %v497_v16 = vadd.f32 %v496_v15, %v428_v14 }
  0xf5   : > { %v533_v17 = vpop.f32.mrf.mxu1 }
  0xf6   : > { %v534_v19 = vadd.f32 %v533_v17, %v497_v16 }
  0xf8   : > { %536 = vst [vmem:[%s177_s13] sm:$0xff] %v534_v19 }
  0xf9   : > { %793 = shalt.err (!%p790_p9)
}
  0xfa   : > { %653 = dma.vmem_to_hbm [thread:$0]  (%p916_p13), %s551_s14, 128, %s553_s15, %s538_s18  }
  0xfb PF: > { %s564_s3 = sand.u32 1, %s824_s9   ;;  %p1245_p10 = scmp.ge.s32.totalorder %s836_s12, 2 }
  0xfc   : > { %s565_s29 = scalar_lea.sflag [#allocation4], %s564_s3 }
  0xfd   : > { %p664_p11 = pnand %p1245_p10, %p921_p4 }
  0xff   : > { %p665_p0 = pneg %p664_p11 }
 0x101   : > { %819 = dma.done.wait (%p665_p0), %s565_s29, 128  }
 0x102   : > { %821 = vsyncadd (%p665_p0), %s565_s29, 4294967168  ;;  %p16_p2 = scmp.ge.s32.totalorder %s896_s23, 4   ;;  %s1246_s9 = smov %s828_s10 }
 0x103   : > { %s1247_s10 = smov %s832_s11  ;;  %s1248_s11 = smov %s908_s26 }
 0x104   : > { %s1249_s12 = smov %s896_s23  ;;  %18 = sbr.rel (!%p16_p2) target bundleno = 6 (0x6), region = 77 }
 0x109   :  { %571 = vsyncpa [#allocation3], 1 }
 0x10a   :  { %573 = vsyncpa [#allocation3 + $0x1], 1 }
 0x10b   :  { %574 = vsyncpa [#allocation6], 1 }
 0x10c   :  { %575 = vsyncpa [#allocation4], 1 }
 0x10d   :  { %577 = vsyncpa [#allocation4 + $0x1], 1 }

</bundles_post_ra>
